<compile_context>
chip_gen: v7x
topology: tpu7x:2x2x1
jax: 0.10.0
libtpu: 0.0.40
codegen_flags: <defaults>
</compile_context>

<pallas_src>
import functools

import jax
import jax.numpy as jnp
from jax.experimental import pallas as pl
from jax.experimental.pallas import tpu as pltpu


# ---------------------------------------------------------------------------
# Kernel
# ---------------------------------------------------------------------------

def _nn_distance_kernel(*refs, metric, tn, N):
    if metric == "l2":
        x_ref, t_ref, tnormh_ref, val_ref, idx_ref, min_scr, tile_scr = refs
    else:  # cosine: no norm stream
        x_ref, t_ref, val_ref, idx_ref, min_scr, tile_scr = refs
        tnormh_ref = None

    k = pl.program_id(1)                                             # N-tile index (inner axis)

    x = x_ref[...]                                                   # (tb, D), resident per batch block
    xt = jnp.dot(x, t_ref[...], preferred_element_type=jnp.float32)  # (tb, tn) on the MXU

    if metric == "l2":
        # Monotone-equivalent of the squared distance: 0.5*||t||^2 - x.t
        # (row-constant ||x||^2, factor 2, clamp and sqrt are applied once in the epilogue).
        d = tnormh_ref[...] - xt
    elif metric == "cosine":
        d = 1.0 - xt                                                 # x, t pre-normalized in wrapper
    else:
        raise ValueError("Unknown distance metric %s" % metric)

    if N % tn != 0:
        # Ragged N: mask out-of-range target columns on the (only) partial tile.
        cols = jax.lax.broadcasted_iota(jnp.int32, d.shape, 1) + k * tn
        d = jnp.where(cols < N, d, jnp.inf)

    @pl.when(k == 0)
    def _():
        min_scr[...] = d
        tile_scr[...] = jnp.zeros_like(tile_scr)

    @pl.when(k > 0)
    def _():
        better = d < min_scr[...]            # strict '<' keeps the earliest tile on ties
        min_scr[...] = jnp.where(better, d, min_scr[...])
        tile_scr[...] = jnp.where(better, k, tile_scr[...])   # scalar splat, no per-step iota

    # Single end-of-grid cross-lane reduction (min + first-occurrence argmin).
    @pl.when(k == pl.num_programs(1) - 1)
    def _():
        rmin = min_scr[...]                                              # (tb, tn)
        row_min = jnp.min(rmin, axis=1, keepdims=True)                   # (tb, 1)
        gidx = tile_scr[...] * tn + jax.lax.broadcasted_iota(jnp.int32, rmin.shape, 1)
        big = jnp.int32(2 ** 30)
        row_arg = jnp.min(jnp.where(rmin == row_min, gidx, big),
                          axis=1, keepdims=True)                         # (tb, 1)
        if metric == "l2":
            xf = x.astype(jnp.float32)
            x_norm_sq = jnp.sum(xf * xf, axis=-1, keepdims=True)         # once per batch block
            val_ref[...] = jnp.sqrt(jnp.maximum(2.0 * row_min + x_norm_sq, 0.0))
        else:
            val_ref[...] = row_min
        idx_ref[...] = row_arg


# ---------------------------------------------------------------------------
# Tiling heuristics (generation- and dtype-aware)
# ---------------------------------------------------------------------------

def _round_up(v, m):
    return ((v + m - 1) // m) * m


def _vmem_capacity_bytes():
    """Physical VMEM of the current TPU generation; conservative fallback (v7x)."""
    try:
        cap = getattr(pltpu.get_tpu_info(), "vmem_capacity_bytes", None)
        if cap:
            return int(cap)
    except Exception:
        pass
    return 64 << 20


def _pick_tb(B):
    # 256 rows fills the 256-wide MXU on v6e/v7x (two 128-row passes on v5e);
    # small batches just round up to the 8-row sublane granule.
    return min(256, _round_up(max(B, 1), 8))


def _pick_tn(N, D, tb, t_bytes, budget_bytes):
    """Largest target tile (multiple of 128, or the full N) fitting the VMEM budget."""
    def vmem_cost(tn):
        return (2 * D * tn * t_bytes        # streamed target tile, double-buffered
                + 2 * 8 * tn * 4            # (1, tn) norm strip, sublane-padded, double-buffered
                + 2 * tb * D * 4            # resident x block (pipeline keeps two buffers)
                + tb * tn * (4 + 4)         # running-min (f32) + tile-index (i32) scratches
                + 2 * tb * 128 * 8)         # tiny (tb, 1) outputs, lane-padded

    for tn in (8192, 4096, 2048, 1024, 512, 256, 128):
        if vmem_cost(tn) <= budget_bytes:
            return N if tn >= N else tn
    return min(N, 128)


# ---------------------------------------------------------------------------
# Wrappers
# ---------------------------------------------------------------------------

def prepare_target_set(target_set, metric):
    """Mirrors the PyTorch __init__ buffer setup; cache the result if targets are reused."""
    target_set = target_set.astype(jnp.float32)
    if metric == "l2":
        t = target_set.T                                            # (D, N)
        tnorm_half = 0.5 * jnp.sum(t * t, axis=0, keepdims=True)    # (1, N): 0.5*||t||^2
    elif metric == "cosine":
        ts = target_set / jnp.linalg.norm(target_set, axis=-1, keepdims=True)
        t = ts.T                                                    # (D, N)
        tnorm_half = None                                           # no norm stream for cosine
    else:
        raise ValueError("Unknown distance metric %s" % metric)
    return t, tnorm_half


def nn_distance_from_prepared(x, t, tnorm_half, metric, tn=None, tb=None,
                              target_dtype=None):
    """x: (B, D) f32; t: (D, N) prepared target buffer; tnorm_half: (1, N) or None."""
    x = x.astype(jnp.float32)
    D, N = t.shape
    B = x.shape[0]
    assert N < 2 ** 30, "argmin sentinel assumes N < 2^30"

    if metric == "cosine":
        # Normalize x once, outside the grid loop (before any batch padding).
        x = x / jnp.linalg.norm(x, axis=-1, keepdims=True)

    t_bytes = 4
    if target_dtype is not None:
        # Optional narrower target stream (halves/quarters HBM traffic); accumulation is f32.
        # Near-tied distances may pick a different (still valid) argmin.
        t = t.astype(target_dtype)
        t_bytes = jnp.dtype(target_dtype).itemsize
        if target_dtype == jnp.bfloat16:
            x = x.astype(jnp.bfloat16)   # keep the MXU on the fast bf16 x bf16 path
    # TODO(synk): optional int8-quantized target path (v5e/v6e MXU only) with per-column
    # scales folded into the epilogue for the most HBM-starved generations.

    if tb is None:
        tb = _pick_tb(B)
    else:
        tb = _round_up(tb, 8)
    Bp = _round_up(B, tb)
    if Bp != B:
        x = jnp.pad(x, ((0, Bp - B), (0, 0)))       # zero rows; results sliced off below

    vmem_cap = _vmem_capacity_bytes()
    vmem_limit = min(int(vmem_cap * 3 // 4), 100 << 20)   # 96 MiB v5e/v6e, 48 MiB v7x
    if tn is None:
        tn = _pick_tn(N, D, tb, t_bytes, int(vmem_limit * 0.8))
    tn = min(tn, N)
    assert tn == N or tn % 128 == 0, "tn must be a multiple of 128 (or the full N)"

    num_k = pl.cdiv(N, tn)
    grid = (Bp // tb, num_k)                         # batch parallel (megacore), N innermost

    kernel = functools.partial(_nn_distance_kernel, metric=metric, tn=tn, N=N)

    x_spec = pl.BlockSpec((tb, D), lambda b, k: (b, 0))     # resident per batch block
    t_spec = pl.BlockSpec((D, tn), lambda b, k: (0, k))     # target_set.T streamed over N
    out_specs = (pl.BlockSpec((tb, 1), lambda b, k: (b, 0)),
                 pl.BlockSpec((tb, 1), lambda b, k: (b, 0)))
    scratch_shapes = [pltpu.VMEM((tb, tn), jnp.float32),    # running elementwise min
                      pltpu.VMEM((tb, tn), jnp.int32)]      # winning tile index

    if metric == "l2":
        in_specs = [x_spec, t_spec, pl.BlockSpec((1, tn), lambda b, k: (0, k))]
        args = (x, t, tnorm_half)
    else:
        in_specs = [x_spec, t_spec]                          # no dummy norm stream
        args = (x, t)

    vals, idxs = pl.pallas_call(
        kernel,
        out_shape=(jax.ShapeDtypeStruct((Bp, 1), jnp.float32),
                   jax.ShapeDtypeStruct((Bp, 1), jnp.int32)),
        grid_spec=pltpu.PrefetchScalarGridSpec(
            num_scalar_prefetch=0,
            grid=grid,
            in_specs=in_specs,
            out_specs=out_specs,
            scratch_shapes=scratch_shapes),
        compiler_params=pltpu.CompilerParams(
            dimension_semantics=("parallel", "arbitrary"),
            vmem_limit_bytes=vmem_limit),
    )(*args)

    return vals[:B, 0], idxs[:B, 0]


def nn_distance(x, target_set, metric="l2", tn=None, tb=None, target_dtype=None):
    """Pallas implementation of NNDistance.forward.

    x:          (B, D) float32
    target_set: (N, D) float32 (as passed to the module __init__)
    returns (min_values (B,), min_indices (B,)) — same as torch.min(dists, dim=1).
    """
    t, tnorm_half = prepare_target_set(target_set, metric)
    return nn_distance_from_prepared(x, t, tnorm_half, metric, tn=tn, tb=tb,
                                     target_dtype=target_dtype)


# ---------------------------------------------------------------------------
# Reference + self-test
# ---------------------------------------------------------------------------

def _reference(x, target_set, metric):
    if metric == "l2":
        t = target_set.T
        tnorm = jnp.sum(t * t, axis=0, keepdims=True)
        d = jnp.sum(x * x, axis=-1, keepdims=True) + tnorm - 2.0 * (x @ t)
        d = jnp.sqrt(jnp.clip(d, 0.0))
    else:
        xh = x / jnp.linalg.norm(x, axis=-1, keepdims=True)
        th = target_set / jnp.linalg.norm(target_set, axis=-1, keepdims=True)
        d = 1.0 - xh @ th.T
    return jnp.min(d, axis=1), jnp.argmin(d, axis=1)


if __name__ == "__main__":
    key = jax.random.PRNGKey(0)
    ok = True

    # Case 1: small, aligned shapes (single tile over N).
    k1, k2 = jax.random.split(key)
    B, D, N = 8, 128, 256
    x = jax.random.normal(k1, (B, D), dtype=jnp.float32)
    targets = jax.random.normal(k2, (N, D), dtype=jnp.float32)
    for metric in ("l2", "cosine"):
        vals, idxs = nn_distance(x, targets, metric=metric)
        jax.block_until_ready((vals, idxs))
        rv, ri = _reference(x, targets, metric)
        ok &= bool(jnp.allclose(vals, rv, atol=1e-4, rtol=1e-4))
        ok &= bool(jnp.array_equal(idxs.astype(jnp.int32), ri.astype(jnp.int32)))

    # Case 2: ragged N (tail masking) + ragged B (batch padding), explicit small tn.
    k3, k4 = jax.random.split(k2)
    B2, D2, N2 = 10, 64, 300
    x2 = jax.random.normal(k3, (B2, D2), dtype=jnp.float32)
    targets2 = jax.random.normal(k4, (N2, D2), dtype=jnp.float32)
    for metric in ("l2", "cosine"):
        vals, idxs = nn_distance(x2, targets2, metric=metric, tn=128)
        jax.block_until_ready((vals, idxs))
        rv, ri = _reference(x2, targets2, metric)
        ok &= bool(jnp.allclose(vals, rv, atol=1e-4, rtol=1e-4))
        ok &= bool(jnp.array_equal(idxs.astype(jnp.int32), ri.astype(jnp.int32)))

    print("KERNEL_OK" if ok else "KERNEL_MISMATCH")
</pallas_src>

<mosaic_0001>
module attributes {stable_mosaic.version = 11 : i64} {
  func.func @_nn_distance_kernel(%arg0: i32, %arg1: i32, %arg2: memref<8x128xf32, #tpu.memory_space<vmem>>, %arg3: memref<128x256xf32, #tpu.memory_space<vmem>>, %arg4: memref<1x256xf32, #tpu.memory_space<vmem>>, %arg5: memref<8x1xf32, #tpu.memory_space<vmem>>, %arg6: memref<8x1xi32, #tpu.memory_space<vmem>>, %arg7: memref<8x256xf32, #tpu.memory_space<vmem>>, %arg8: memref<8x256xi32, #tpu.memory_space<vmem>>) attributes {dimension_semantics = [#tpu.dimension_semantics<parallel>, #tpu.dimension_semantics<arbitrary>], iteration_bounds = array<i64: 1, 1>, scalar_prefetch = 0 : i64, scratch_operands = 2 : i64, tpu.core_type = #tpu.core_type<tc>, window_params = [{transform_indices = @transform_0, window_bounds = array<i64: 8, 128>}, {transform_indices = @transform_1, window_bounds = array<i64: 128, 256>}, {transform_indices = @transform_2, window_bounds = array<i64: 1, 256>}, {transform_indices = @transform_3, window_bounds = array<i64: 8, 1>}, {transform_indices = @transform_4, window_bounds = array<i64: 8, 1>}]} {
    %c0 = arith.constant 0 : index
    %c0_0 = arith.constant 0 : index
    %0 = vector.load %arg2[%c0, %c0_0] : memref<8x128xf32, #tpu.memory_space<vmem>>, vector<8x128xf32>
    %c0_1 = arith.constant 0 : index
    %c0_2 = arith.constant 0 : index
    %1 = vector.load %arg3[%c0_1, %c0_2] : memref<128x256xf32, #tpu.memory_space<vmem>>, vector<128x256xf32>
    %cst = arith.constant dense<0.000000e+00> : vector<8x256xf32>
    %2 = tpu.matmul %0, %1, %cst {dimension_numbers = #tpu.dot_dimension_numbers<[1], [0], [0], [1], [0, 0, 1, 1], [], []>} : vector<8x128xf32>, vector<128x256xf32>, vector<8x256xf32> -> vector<8x256xf32>
    %c0_3 = arith.constant 0 : index
    %c0_4 = arith.constant 0 : index
    %3 = vector.load %arg4[%c0_3, %c0_4] : memref<1x256xf32, #tpu.memory_space<vmem>>, vector<1x256xf32>
    %4 = vector.broadcast %3 : vector<1x256xf32> to vector<8x256xf32>
    %5 = arith.subf %4, %2 : vector<8x256xf32>
    %c0_i32 = arith.constant 0 : i32
    %6 = arith.cmpi eq, %arg1, %c0_i32 : i32
    %7 = arith.extui %6 : i1 to i32
    %c0_i32_5 = arith.constant 0 : i32
    %8 = arith.cmpi ne, %7, %c0_i32_5 : i32
    scf.if %8 {
      %c0_10 = arith.constant 0 : index
      %c0_11 = arith.constant 0 : index
      %15 = vector.load %arg7[%c0_10, %c0_11] : memref<8x256xf32, #tpu.memory_space<vmem>>, vector<8x256xf32>
      tpu.vector_store %arg7[%c0_10, %c0_11], %5 {strides = array<i32>} : memref<8x256xf32, #tpu.memory_space<vmem>>, vector<8x256xf32>,
      %c0_i32_12 = arith.constant 0 : i32
      %16 = vector.broadcast %c0_i32_12 : i32 to vector<8x256xi32>
      %c0_13 = arith.constant 0 : index
      %c0_14 = arith.constant 0 : index
      %17 = vector.load %arg8[%c0_13, %c0_14] : memref<8x256xi32, #tpu.memory_space<vmem>>, vector<8x256xi32>
      tpu.vector_store %arg8[%c0_13, %c0_14], %16 {strides = array<i32>} : memref<8x256xi32, #tpu.memory_space<vmem>>, vector<8x256xi32>,
    } else {
    }
    %c0_i32_6 = arith.constant 0 : i32
    %9 = arith.cmpi sgt, %arg1, %c0_i32_6 : i32
    %10 = arith.extui %9 : i1 to i32
    %c0_i32_7 = arith.constant 0 : i32
    %11 = arith.cmpi ne, %10, %c0_i32_7 : i32
    scf.if %11 {
      %c0_10 = arith.constant 0 : index
      %c0_11 = arith.constant 0 : index
      %15 = vector.load %arg7[%c0_10, %c0_11] : memref<8x256xf32, #tpu.memory_space<vmem>>, vector<8x256xf32>
      %16 = arith.cmpf olt, %5, %15 : vector<8x256xf32>
      %c0_12 = arith.constant 0 : index
      %c0_13 = arith.constant 0 : index
      %17 = vector.load %arg7[%c0_12, %c0_13] : memref<8x256xf32, #tpu.memory_space<vmem>>, vector<8x256xf32>
      %18 = arith.select %16, %5, %17 : vector<8x256xi1>, vector<8x256xf32>
      %c0_14 = arith.constant 0 : index
      %c0_15 = arith.constant 0 : index
      %19 = vector.load %arg7[%c0_14, %c0_15] : memref<8x256xf32, #tpu.memory_space<vmem>>, vector<8x256xf32>
      tpu.vector_store %arg7[%c0_14, %c0_15], %18 {strides = array<i32>} : memref<8x256xf32, #tpu.memory_space<vmem>>, vector<8x256xf32>,
      %c0_16 = arith.constant 0 : index
      %c0_17 = arith.constant 0 : index
      %20 = vector.load %arg8[%c0_16, %c0_17] : memref<8x256xi32, #tpu.memory_space<vmem>>, vector<8x256xi32>
      %21 = vector.broadcast %arg1 : i32 to vector<8x256xi32>
      %22 = arith.select %16, %21, %20 : vector<8x256xi1>, vector<8x256xi32>
      %c0_18 = arith.constant 0 : index
      %c0_19 = arith.constant 0 : index
      %23 = vector.load %arg8[%c0_18, %c0_19] : memref<8x256xi32, #tpu.memory_space<vmem>>, vector<8x256xi32>
      tpu.vector_store %arg8[%c0_18, %c0_19], %22 {strides = array<i32>} : memref<8x256xi32, #tpu.memory_space<vmem>>, vector<8x256xi32>,
    } else {
    }
    %c0_i32_8 = arith.constant 0 : i32
    %12 = arith.cmpi eq, %arg1, %c0_i32_8 : i32
    %13 = arith.extui %12 : i1 to i32
    %c0_i32_9 = arith.constant 0 : i32
    %14 = arith.cmpi ne, %13, %c0_i32_9 : i32
    scf.if %14 {
      %c0_10 = arith.constant 0 : index
      %c0_11 = arith.constant 0 : index
      %15 = vector.load %arg7[%c0_10, %c0_11] : memref<8x256xf32, #tpu.memory_space<vmem>>, vector<8x256xf32>
      %cst_12 = arith.constant dense<0x7F800000> : vector<8xf32>
      %16 = vector.multi_reduction <minimumf>, %15, %cst_12 [1] : vector<8x256xf32> to vector<8xf32>
      %17 = vector.shape_cast %16 : vector<8xf32> to vector<8x1xf32>
      %c0_13 = arith.constant 0 : index
      %c0_14 = arith.constant 0 : index
      %18 = vector.load %arg8[%c0_13, %c0_14] : memref<8x256xi32, #tpu.memory_space<vmem>>, vector<8x256xi32>
      %c256_i32 = arith.constant 256 : i32
      %19 = vector.broadcast %c256_i32 : i32 to vector<8x256xi32>
      %20 = arith.muli %18, %19 : vector<8x256xi32>
      %21 = tpu.iota {dimensions = array<i32: 1>} : vector<8x256xi32>
      %22 = arith.addi %20, %21 : vector<8x256xi32>
      %23 = vector.broadcast %17 : vector<8x1xf32> to vector<8x256xf32>
      %24 = arith.cmpf oeq, %15, %23 : vector<8x256xf32>
      %c1073741824_i32 = arith.constant 1073741824 : i32
      %25 = vector.broadcast %c1073741824_i32 : i32 to vector<8x256xi32>
      %26 = arith.select %24, %22, %25 : vector<8x256xi1>, vector<8x256xi32>
      %cst_15 = arith.constant dense<2147483647> : vector<8xi32>
      %27 = vector.multi_reduction <minsi>, %26, %cst_15 [1] : vector<8x256xi32> to vector<8xi32>
      %28 = vector.shape_cast %27 : vector<8xi32> to vector<8x1xi32>
      %29 = arith.mulf %0, %0 : vector<8x128xf32>
      %cst_16 = arith.constant dense<0.000000e+00> : vector<8xf32>
      %30 = vector.multi_reduction <add>, %29, %cst_16 [1] : vector<8x128xf32> to vector<8xf32>
      %31 = vector.shape_cast %30 : vector<8xf32> to vector<8x1xf32>
      %cst_17 = arith.constant 2.000000e+00 : f32
      %32 = vector.broadcast %cst_17 : f32 to vector<8x1xf32>
      %33 = arith.mulf %32, %17 : vector<8x1xf32>
      %34 = arith.addf %33, %31 : vector<8x1xf32>
      %cst_18 = arith.constant 0.000000e+00 : f32
      %35 = vector.broadcast %cst_18 : f32 to vector<8x1xf32>
      %36 = arith.maximumf %34, %35 : vector<8x1xf32>
      %37 = math.sqrt %36 : vector<8x1xf32>
      %c0_19 = arith.constant 0 : index
      %c0_20 = arith.constant 0 : index
      %38 = vector.load %arg5[%c0_19, %c0_20] : memref<8x1xf32, #tpu.memory_space<vmem>>, vector<8x1xf32>
      tpu.vector_store %arg5[%c0_19, %c0_20], %37 {strides = array<i32>} : memref<8x1xf32, #tpu.memory_space<vmem>>, vector<8x1xf32>,
      %c0_21 = arith.constant 0 : index
      %c0_22 = arith.constant 0 : index
      %39 = vector.load %arg6[%c0_21, %c0_22] : memref<8x1xi32, #tpu.memory_space<vmem>>, vector<8x1xi32>
      tpu.vector_store %arg6[%c0_21, %c0_22], %28 {strides = array<i32>} : memref<8x1xi32, #tpu.memory_space<vmem>>, vector<8x1xi32>,
    } else {
    }
    return
  }
  func.func @transform_0(%arg0: i32, %arg1: i32) -> (i32, i32) {
    %c0_i32 = arith.constant 0 : i32
    %c0_i32_0 = arith.constant 0 : i32
    return %arg0, %c0_i32 : i32, i32
  }
  func.func @transform_1(%arg0: i32, %arg1: i32) -> (i32, i32) {
    %c0_i32 = arith.constant 0 : i32
    %c0_i32_0 = arith.constant 0 : i32
    return %c0_i32, %arg1 : i32, i32
  }
  func.func @transform_2(%arg0: i32, %arg1: i32) -> (i32, i32) {
    %c0_i32 = arith.constant 0 : i32
    %c0_i32_0 = arith.constant 0 : i32
    return %c0_i32, %arg1 : i32, i32
  }
  func.func @transform_3(%arg0: i32, %arg1: i32) -> (i32, i32) {
    %c0_i32 = arith.constant 0 : i32
    %c0_i32_0 = arith.constant 0 : i32
    return %arg0, %c0_i32 : i32, i32
  }
  func.func @transform_4(%arg0: i32, %arg1: i32) -> (i32, i32) {
    %c0_i32 = arith.constant 0 : i32
    %c0_i32_0 = arith.constant 0 : i32
    return %arg0, %c0_i32 : i32, i32
  }
}

</mosaic_0001>

<bundles_post_ra>
// kernel: tpu_custom_call.1
= control target key start
LH: loop header
LB: loop body
LE: loop exit
PB: predicated region body
PF: predicated region fallthrough
CT: control target
= control target key end

     0   :  { %10 = vsyncpa [#allocation5], 0  ;;  %s409_s0 = inlined_call_operand.hbm [shape: f32[8,128], index: 0, kind: input, shape index: {}]   ;;  %s410_s1 = inlined_call_operand.hbm [shape: f32[128,256], index: 1, kind: input, shape index: {}]   ;;  %s411_s2 = inlined_call_operand.vmem [shape: f32[1,256], index: 2, kind: input, shape index: {}]   ;;  %s412_s3 = inlined_call_operand.vmem [shape: f32[8,1], index: 3, kind: output, shape index: {0}]   ;;  %s413_s4 = inlined_call_operand.vmem [shape: s32[8,1], index: 4, kind: output, shape index: {1}]  }
   0x1   :  { %11 = vsyncpa [#allocation7], 0  ;;  %s337_s15 = smov [#allocation4]   ;;  %s338_s17 = smov [#allocation6]  }
   0x2   :  { %s18_s16 = sshll.u32 %s337_s15, 4  ;;  %s27_s18 = sshll.u32 %s338_s17, 4  ;;  %s19_s16 = int_to_ptr.vmem [resolvable:$true] %s18_s16  ;;  %s367_s18 = int_to_ptr.vmem [resolvable:$true] %s27_s18 }
   0x3   :  { %s289_s21 = scalar_lea.hbm %s409_s0, 128 }
   0x4   :  { %p290_p0 = scmp.ne.s32.totalorder %s409_s0, %s289_s21  ;;  %p293_p1 = scmp.lt.u32.totalorder %s289_s21, %s409_s0 }
   0x6   :  { %p295_p2 = pnand %p293_p1, %p290_p0 }
   0x8   :  { %298 = shalt.err (!%p295_p2)
}
   0x9   :  { %s299_s26 = scalar_lea.vmem %s19_s16, 128  ;;  %p304_p4 = scmp.lt.s32.totalorder %s19_s16, %s19_s16 }
   0xa   :  { %p300_p3 = scmp.ne.s32.totalorder %s19_s16, %s299_s26  ;;  %p305_p5 = scmp.lt.s32.totalorder %s299_s26, %s299_s26 }
   0xc   :  { %p306_p6 = por %p305_p5, %p304_p4 }
   0xe   :  { %p307_p7 = pnand %p306_p6, %p300_p3 }
  0x10   :  { %310 = shalt.err (!%p307_p7)
}
  0x11   :  { %21 = dma.hbm_to_vmem [thread:$0]  %s409_s0, 128, %s19_s16, [#allocation5]  }
  0x12   :  { %s311_s5 = scalar_lea.hbm %s410_s1, 4096 }
  0x13   :  { %p312_p8 = scmp.ne.s32.totalorder %s410_s1, %s311_s5  ;;  %p315_p9 = scmp.lt.u32.totalorder %s311_s5, %s410_s1 }
  0x15   :  { %p317_p10 = pnand %p315_p9, %p312_p8 }
  0x17   :  { %320 = shalt.err (!%p317_p10)
}
  0x18   :  { %s321_s10 = scalar_lea.vmem %s367_s18, 4096  ;;  %p326_p12 = scmp.lt.s32.totalorder %s367_s18, %s367_s18 }
  0x19   :  { %p322_p11 = scmp.ne.s32.totalorder %s367_s18, %s321_s10  ;;  %p327_p13 = scmp.lt.s32.totalorder %s321_s10, %s321_s10 }
  0x1b   :  { %p328_p0 = por %p327_p13, %p326_p12 }
  0x1d   :  { %p329_p1 = pnand %p328_p0, %p322_p11 }
  0x1f   :  { %332 = shalt.err (!%p329_p1)
}
  0x20   :  { %s339_s0 = smov 256   ;;  %s340_s11 = smov 16  }
  0x21   :  { %33 = dma.hbm_to_vmem [thread:$0]  %s410_s1, 4096, %s367_s18, [#allocation7], %s339_s0, %s339_s0, %s340_s11  }
  0x22   :  { %333 = dma.done.wait [#allocation5], 128  }
  0x23   :  { %334 = vsyncadd [#allocation5], 4294967168 }
  0x24   :  { %335 = dma.done.wait [#allocation7], 4096  }
  0x25   :  { %336 = vsyncadd [#allocation7], 4294963200  ;;  %v341_v0 = vmov 0.0   ;;  %v44_v1 = vld [vmem:[#allocation6 + $0x8] sm:$0xff]  ;;  %v46_v2 = vld [vmem:[#allocation6 + $0x18] sm:$0xff]  ;;  %v148_v51 = vlaneseq  ;;  %vm237_vm4 = vcmask 7168  }
  0x26   :  { %139 = vmatprep.mubr.f32.mxu0 %v341_v0  ;;  %v43_v3 = vld [vmem:[#allocation6] sm:$0xff]  ;;  %v250_v4 = vpack.c.bf16 %v46_v2, %v44_v1  ;;  %v45_v5 = vld [vmem:[#allocation6 + $0x10] sm:$0xff]  ;;  %v48_v6 = vld [vmem:[#allocation6 + $0x28] sm:$0xff] }
  0x27   :  { %v50_v7 = vld [vmem:[#allocation6 + $0x38] sm:$0xff]  ;;  %v252_v8 = vpack.c.bf16 %v45_v5, %v43_v3  ;;  %v47_v10 = vld [vmem:[#allocation6 + $0x20] sm:$0xff]  ;;  %v49_v11 = vld [vmem:[#allocation6 + $0x30] sm:$0xff]  ;;  %v149_v52 = vshrl.u32 %v148_v51, 7  ;;  %v200_v63 = vand.u32 127, %v148_v51 }
  0x28   :  { %v254_v9 = vpack.c.bf16 %v50_v7, %v48_v6  ;;  %v52_v12 = vld [vmem:[#allocation6 + $0x48] sm:$0xff]  ;;  %251 = vmatprep.subr.bf16.mxu0 %v250_v4  ;;  %v54_v13 = vld [vmem:[#allocation6 + $0x58] sm:$0xff]  ;;  %v256_v14 = vpack.c.bf16 %v49_v11, %v47_v10  ;;  %v51_v16 = vld [vmem:[#allocation6 + $0x40] sm:$0xff] }
  0x29   :  { %253 = vmatpush1.bf16.msra.mxu0 %v252_v8  ;;  %v258_v15 = vpack.c.bf16 %v54_v13, %v52_v12  ;;  %v53_v17 = vld [vmem:[#allocation6 + $0x50] sm:$0xff]  ;;  %v56_v18 = vld [vmem:[#allocation6 + $0x68] sm:$0xff]  ;;  %v58_v19 = vld [vmem:[#allocation6 + $0x78] sm:$0xff]  ;;  %v150_v53 = vsub.s32 0, %v149_v52  ;;  %v154_v55 = vsub.s32 1, %v149_v52  ;;  %v201_v0 = vadd.s32 128, %v200_v63 }
  0x2a   :  { %255 = vmatprep.subr.bf16.mxu0 %v254_v9  ;;  %v260_v20 = vpack.c.bf16 %v53_v17, %v51_v16  ;;  %v262_v21 = vpack.c.bf16 %v58_v19, %v56_v18  ;;  %v55_v22 = vld [vmem:[#allocation6 + $0x60] sm:$0xff]  ;;  %v57_v23 = vld [vmem:[#allocation6 + $0x70] sm:$0xff]  ;;  %v60_v24 = vld [vmem:[#allocation6 + $0x88] sm:$0xff] }
  0x2b   :  { %v62_v25 = vld [vmem:[#allocation6 + $0x98] sm:$0xff]  ;;  %v264_v26 = vpack.c.bf16 %v57_v23, %v55_v22  ;;  %v59_v28 = vld [vmem:[#allocation6 + $0x80] sm:$0xff]  ;;  %v61_v29 = vld [vmem:[#allocation6 + $0x90] sm:$0xff] }
  0x2c   :  { %v266_v27 = vpack.c.bf16 %v62_v25, %v60_v24  ;;  %v64_v30 = vld [vmem:[#allocation6 + $0xa8] sm:$0xff]  ;;  %v66_v31 = vld [vmem:[#allocation6 + $0xb8] sm:$0xff]  ;;  %v268_v32 = vpack.c.bf16 %v61_v29, %v59_v28  ;;  %v63_v34 = vld [vmem:[#allocation6 + $0xa0] sm:$0xff] }
  0x2d   :  { %257 = vmatpush1.bf16.msra.mxu0 %v256_v14  ;;  %v270_v33 = vpack.c.bf16 %v66_v31, %v64_v30  ;;  %v65_v35 = vld [vmem:[#allocation6 + $0xb0] sm:$0xff]  ;;  %v68_v36 = vld [vmem:[#allocation6 + $0xc8] sm:$0xff]  ;;  %v70_v37 = vld [vmem:[#allocation6 + $0xd8] sm:$0xff] }
  0x2e   :  { %259 = vmatprep.subr.bf16.mxu0 %v258_v15  ;;  %v272_v38 = vpack.c.bf16 %v65_v35, %v63_v34  ;;  %v274_v39 = vpack.c.bf16 %v70_v37, %v68_v36  ;;  %v67_v40 = vld [vmem:[#allocation6 + $0xc0] sm:$0xff]  ;;  %v69_v41 = vld [vmem:[#allocation6 + $0xd0] sm:$0xff]  ;;  %v72_v42 = vld [vmem:[#allocation6 + $0xe8] sm:$0xff] }
  0x2f   :  { %v74_v43 = vld [vmem:[#allocation6 + $0xf8] sm:$0xff]  ;;  %v276_v44 = vpack.c.bf16 %v69_v41, %v67_v40  ;;  %v71_v46 = vld [vmem:[#allocation6 + $0xe0] sm:$0xff]  ;;  %v73_v47 = vld [vmem:[#allocation6 + $0xf0] sm:$0xff] }
  0x30   :  { %v278_v45 = vpack.c.bf16 %v74_v43, %v72_v42  ;;  %v280_v48 = vpack.c.bf16 %v73_v47, %v71_v46  ;;  %v42_v49 = vld [vmem:[#allocation4] sm:$0xff] }
  0x31   :  { %261 = vmatpush1.bf16.msra.mxu0 %v260_v20  ;;  %v224_v50 = vmul.f32 %v42_v49, %v42_v49  ;;  %v146_v54 = vld [vmem:[%s411_s2] sm:$0x3] }
  0x32   :  { %263 = vmatprep.subr.bf16.mxu0 %v262_v21  ;;  %v151_v56 = vrot.slane %v146_v54, %v150_v53  ;;  %v155_v57 = vrot.slane %v146_v54, %v154_v55 }
  0x33   :  { %225 = vadd.xlane.f32.xlu1 %v224_v50 }
  0x35   :  { %265 = vmatpush1.bf16.msra.mxu0 %v264_v26 }
  0x36   :  { %267 = vmatprep.subr.bf16.mxu0 %v266_v27 }
  0x39   :  { %269 = vmatpush1.bf16.msra.mxu0 %v268_v32 }
  0x3a   :  { %271 = vmatprep.subr.bf16.mxu0 %v270_v33 }
  0x3d   :  { %273 = vmatpush1.bf16.msra.mxu0 %v272_v38 }
  0x3e   :  { %275 = vmatprep.subr.bf16.mxu0 %v274_v39 }
  0x41   :  { %277 = vmatpush1.bf16.msra.mxu0 %v276_v44 }
  0x42   :  { %279 = vmatprep.subr.bf16.mxu0 %v278_v45 }
  0x45   :  { %281 = vmatpush1.bf16.msra.mxu0 %v280_v48 }
  0x48   :  { %140 = vmatmul.mubr.f32.vlgmr.msra.gmra.mrb[0].mxu0 %v42_v49 }
  0xc0   :  { %v226_v2 = vpop.xlane.xlu1 %225 }
 0x11b   :  { %v141_v58 = vpop.f32.mrb[0].mxu0 }
 0x11c   :  { %v158_v59 = vsub.f32 %v151_v56, %v141_v58  ;;  %v143_v60 = vpop.f32.mrb[1].mxu0 }
 0x11d   :  { %v159_v61 = vsub.f32 %v155_v57, %v143_v60 }
 0x11f   :  { %v192_v62 = vmin.f32 %v158_v59, %v159_v61 }
 0x121   :  { %193 = vmin.xlane.f32.xlu0 %v192_v62 }
 0x1ae   :  { %v194_v1 = vpop.xlane.xlu0 %193 }
 0x1af   :  { %vm204_vm0 = vcmp.eq.f32.partialorder %v158_v59, %v194_v1  ;;  %vm205_vm1 = vcmp.eq.f32.partialorder %v159_v61, %v194_v1  ;;  %v227_v3 = vmul.f32 2.0, %v194_v1 }
 0x1b0   :  { %v206_v4 = vsel %vm204_vm0, %v200_v63, 1073741824  ;;  %v207_v5 = vsel %vm205_vm1, %v201_v0, 1073741824 }
 0x1b1   :  { %v228_v6 = vadd.f32 %v227_v3, %v226_v2  ;;  %vm208_vm2 = vcmp.lt.s32.totalorder %v206_v4, %v207_v5 }
 0x1b2   :  { %v209_v7 = vsel %vm208_vm2, %v206_v4, %v207_v5 }
 0x1b3   :  { %v229_v8 = vmax.f32 %v228_v6, 0.0  ;;  %v211_v9 = vshra.s32 %v209_v7, 16  ;;  %v210_v16 = vand.u32 65535, %v209_v7 }
 0x1b5   :  { %287 = vrsqrt.f32 %v229_v8  ;;  %v213_v10 = vcvt.s32.f32 %v211_v9  ;;  %vm232_vm3 = vcmp.eq.f32.partialorder %v229_v8, inf  ;;  %v235_v13 = vand.u32 2147483648, %v229_v8 }
 0x1b6   :  { %vm234_vm5 = vcmp.eq.f32.partialorder %v229_v8, 0.0  ;;  %v212_v18 = vcvt.s32.f32 %v210_v16 }
 0x1b7   :  { %214 = vmin.xlane.f32.xlu0 %v213_v10 }
 0x1bf   :  { %v288_v11 = vpop.eup %287 }
 0x1c0   :  { %v231_v12 = vmul.f32 %v288_v11, %v229_v8 }
 0x1c2   :  { %v233_v14 = vsel %vm232_vm3, %v229_v8, %v231_v12 }
 0x1c3   :  { %v236_v15 = vsel %vm234_vm5, %v235_v13, %v233_v14 }
 0x1c4   :  { %238 = vst.msk [vmem:[%s412_s3] sm:$0xff] %vm237_vm4, %v236_v15 }
 0x244   :  { %v215_v17 = vpop.xlane.xlu0 %214 }
 0x245   :  { %vm216_vm6 = vcmp.eq.f32.partialorder %v213_v10, %v215_v17  ;;  %v221_v20 = vcvt.f32.s32 %v215_v17 }
 0x246   :  { %v217_v19 = vsel %vm216_vm6, %v212_v18, inf }
 0x247   :  { %218 = vmin.xlane.f32.xlu1 %v217_v19  ;;  %v222_v22 = vshll.u32 %v221_v20, 16 }
 0x2d4   :  { %v219_v21 = vpop.xlane.xlu1 %218 }
 0x2d5   :  { %v220_v23 = vcvt.f32.s32 %v219_v21 }
 0x2d7   :  { %v223_v24 = vadd.s32 %v222_v22, %v220_v23 }
 0x2d9   :  { %239 = vst.msk [vmem:[%s413_s4] sm:$0xff] %vm237_vm4, %v223_v24 }
 0x2da   :  { %248 = vsyncpa [#allocation5], 1 }
 0x2db   :  { %249 = vsyncpa [#allocation7], 1 }

</bundles_post_ra>
